<compile_context>
chip_gen: v7x
topology: tpu7x:2x2x1
jax: 0.10.0
libtpu: 0.0.40
codegen_flags: <defaults>
</compile_context>

<pallas_src>
import functools

import jax
import jax.numpy as jnp
from jax.experimental import pallas as pl
from jax.experimental.pallas import tpu as pltpu

_LANE = 128     # TPU lane width: pad the class dim to this for dense stores
_SUBLANE = 8    # f32 sublane granularity


def _round_up(n: int, m: int) -> int:
    return ((n + m - 1) // m) * m


def iris_kernel(x_ref, w_ref, b_ref, o_ref, *, d_out: int):
    """Fused linear -> relu -> masked softmax over a (TB, LANE_PAD) tile."""
    x = x_ref[...]                       # (TB, D_in)        f32
    w = w_ref[...]                       # (D_in, LANE_PAD)  f32 (zero-padded cols)
    b = b_ref[...]                       # (1,    LANE_PAD)  f32 (zero-padded)

    logits = jnp.dot(x, w, preferred_element_type=jnp.float32) + b
    relud = jnp.maximum(logits, 0.0)     # padded lanes stay at exactly 0

    # Lane-validity mask (compile-time pattern): only the first d_out lanes
    # participate in the softmax; padded lanes are written as 0.
    lane = jax.lax.broadcasted_iota(jnp.int32, relud.shape, dimension=1)
    valid = lane < d_out

    # Numerically-stable softmax over the valid lanes.  All relu'd values are
    # >= 0 and padded lanes are exactly 0, so the row-max over the padded slab
    # equals the row-max over just the valid lanes.
    m = jnp.max(relud, axis=-1, keepdims=True)
    e = jnp.where(valid, jnp.exp(relud - m), 0.0)
    denom = jnp.sum(e, axis=-1, keepdims=True)
    o_ref[...] = (e * pl.reciprocal(denom, approx=True)).astype(o_ref.dtype)


def prepare_iris_params(weight, bias, lane_pad: int = _LANE):
    """One-time parameter prep (hoisted out of the per-call path).

    weight: (D_out, D_in) torch.nn.Linear layout; bias: (D_out,).
    Returns (w_t_padded, b_padded) with the class dim zero-padded to lane_pad.
    """
    d_out, d_in = weight.shape
    pad = _round_up(max(d_out, 1), lane_pad)
    w_t = jnp.zeros((d_in, pad), jnp.float32).at[:, :d_out].set(
        jnp.asarray(weight, jnp.float32).T)
    b_p = jnp.zeros((1, pad), jnp.float32).at[:, :d_out].set(
        jnp.asarray(bias, jnp.float32))
    return w_t, b_p


@functools.partial(jax.jit, static_argnames=("d_out", "block_rows"))
def iris_forward(x, w_prepped, b_prepped, *, d_out: int, block_rows: int = 512):
    """x: (B, D_in) f32.  Returns softmax(relu(x @ W.T + b)) of shape (B, d_out)."""
    B, d_in = x.shape
    lane_pad = w_prepped.shape[1]

    # Row tile: big enough to amortize per-step overhead (~0.35 us), capped by
    # the 8-sublane-aligned batch so tiny batches stay a single program.
    tb = min(block_rows, _round_up(B, _SUBLANE))
    b_pad = _round_up(B, tb)
    if b_pad != B:
        x = jnp.pad(x, ((0, b_pad - B), (0, 0)))

    out = pl.pallas_call(
        functools.partial(iris_kernel, d_out=d_out),
        out_shape=jax.ShapeDtypeStruct((b_pad, lane_pad), jnp.float32),
        grid=(pl.cdiv(b_pad, tb),),
        in_specs=[
            # Batch tile of activations marches over the grid.
            pl.BlockSpec((tb, d_in), lambda i: (i, 0)),
            # Weight / bias are grid-invariant -> stay resident in VMEM.
            pl.BlockSpec((d_in, lane_pad), lambda i: (0, 0)),
            pl.BlockSpec((1, lane_pad), lambda i: (0, 0)),
        ],
        out_specs=pl.BlockSpec((tb, lane_pad), lambda i: (i, 0)),
        compiler_params=pltpu.CompilerParams(
            dimension_semantics=("parallel",)),
    )(x, w_prepped, b_prepped)

    return out[:B, :d_out]


def _reference(x, weight, bias):
    logits = x @ weight.T + bias[None, :]
    relud = jnp.maximum(logits, 0.0)
    return jax.nn.softmax(relud, axis=-1)


if __name__ == "__main__":
    input_dim, output_dim = 4, 3
    key = jax.random.PRNGKey(0)
    kx, kw, kb, kx2 = jax.random.split(key, 4)

    # torch.nn.Linear-style init: U[-1/sqrt(in), 1/sqrt(in)]
    bound = 1.0 / (input_dim ** 0.5)
    weight = jax.random.uniform(kw, (output_dim, input_dim), jnp.float32,
                                minval=-bound, maxval=bound)
    bias = jax.random.uniform(kb, (output_dim,), jnp.float32,
                              minval=-bound, maxval=bound)

    # One-time parameter prep (no per-call transpose/reshape glue).
    w_prepped, b_prepped = prepare_iris_params(weight, bias)

    # Small iris-sized batch.
    batch = 8
    x = jax.random.normal(kx, (batch, input_dim), dtype=jnp.float32)
    out = jax.block_until_ready(
        iris_forward(x, w_prepped, b_prepped, d_out=output_dim))
    ref = _reference(x, weight, bias)
    assert out.shape == (batch, output_dim)
    assert jnp.allclose(out, ref, rtol=5e-3, atol=5e-3)
    assert jnp.allclose(jnp.sum(out, axis=-1), 1.0, atol=5e-3)

    # Larger, ragged batch: exercises the multi-step parallel grid + padding.
    batch2 = 1040
    x2 = jax.random.normal(kx2, (batch2, input_dim), dtype=jnp.float32)
    out2 = jax.block_until_ready(
        iris_forward(x2, w_prepped, b_prepped, d_out=output_dim))
    ref2 = _reference(x2, weight, bias)
    assert out2.shape == (batch2, output_dim)
    assert jnp.allclose(out2, ref2, rtol=5e-3, atol=5e-3)

    print("KERNEL_OK")
</pallas_src>

<mosaic_0001>
module attributes {stable_mosaic.version = 11 : i64} {
  func.func @iris_kernel(%arg0: i32, %arg1: memref<8x4xf32, #tpu.memory_space<vmem>>, %arg2: memref<4x128xf32, #tpu.memory_space<vmem>>, %arg3: memref<1x128xf32, #tpu.memory_space<vmem>>, %arg4: memref<8x128xf32, #tpu.memory_space<vmem>>) attributes {dimension_semantics = [#tpu.dimension_semantics<parallel>], iteration_bounds = array<i64: 1>, scalar_prefetch = 0 : i64, scratch_operands = 0 : i64, tpu.core_type = #tpu.core_type<tc>, window_params = [{transform_indices = @transform_0, window_bounds = array<i64: 8, 4>}, {pipeline_mode = #tpu.pipeline_mode<synchronous>, transform_indices = @transform_1, window_bounds = array<i64: 4, 128>}, {pipeline_mode = #tpu.pipeline_mode<synchronous>, transform_indices = @transform_2, window_bounds = array<i64: 1, 128>}, {transform_indices = @transform_3, window_bounds = array<i64: 8, 128>}]} {
    %c0 = arith.constant 0 : index
    %c0_0 = arith.constant 0 : index
    %0 = vector.load %arg1[%c0, %c0_0] : memref<8x4xf32, #tpu.memory_space<vmem>>, vector<8x4xf32>
    %c0_1 = arith.constant 0 : index
    %c0_2 = arith.constant 0 : index
    %1 = vector.load %arg2[%c0_1, %c0_2] : memref<4x128xf32, #tpu.memory_space<vmem>>, vector<4x128xf32>
    %c0_3 = arith.constant 0 : index
    %c0_4 = arith.constant 0 : index
    %2 = vector.load %arg3[%c0_3, %c0_4] : memref<1x128xf32, #tpu.memory_space<vmem>>, vector<1x128xf32>
    %cst = arith.constant dense<0.000000e+00> : vector<8x128xf32>
    %3 = tpu.matmul %0, %1, %cst {dimension_numbers = #tpu.dot_dimension_numbers<[1], [0], [0], [1], [0, 0, 1, 1], [], []>} : vector<8x4xf32>, vector<4x128xf32>, vector<8x128xf32> -> vector<8x128xf32>
    %4 = vector.broadcast %2 : vector<1x128xf32> to vector<8x128xf32>
    %5 = arith.addf %3, %4 : vector<8x128xf32>
    %cst_5 = arith.constant 0.000000e+00 : f32
    %6 = vector.broadcast %cst_5 : f32 to vector<8x128xf32>
    %7 = arith.maximumf %5, %6 : vector<8x128xf32>
    %8 = tpu.iota {dimensions = array<i32: 1>} : vector<8x128xi32>
    %c3_i32 = arith.constant 3 : i32
    %9 = vector.broadcast %c3_i32 : i32 to vector<8x128xi32>
    %10 = arith.cmpi slt, %8, %9 : vector<8x128xi32>
    %cst_6 = arith.constant dense<0xFF800000> : vector<8xf32>
    %11 = vector.multi_reduction <maximumf>, %7, %cst_6 [1] : vector<8x128xf32> to vector<8xf32>
    %12 = vector.shape_cast %11 : vector<8xf32> to vector<8x1xf32>
    %13 = vector.broadcast %12 : vector<8x1xf32> to vector<8x128xf32>
    %14 = arith.subf %7, %13 : vector<8x128xf32>
    %15 = math.exp %14 : vector<8x128xf32>
    %cst_7 = arith.constant 0.000000e+00 : f32
    %16 = vector.broadcast %cst_7 : f32 to vector<8x128xf32>
    %17 = arith.select %10, %15, %16 : vector<8x128xi1>, vector<8x128xf32>
    %cst_8 = arith.constant dense<0.000000e+00> : vector<8xf32>
    %18 = vector.multi_reduction <add>, %17, %cst_8 [1] : vector<8x128xf32> to vector<8xf32>
    %19 = vector.shape_cast %18 : vector<8xf32> to vector<8x1xf32>
    %20 = tpu.reciprocal %19 {approx = true} : vector<8x1xf32> -> vector<8x1xf32>
    %21 = vector.broadcast %20 : vector<8x1xf32> to vector<8x128xf32>
    %22 = arith.mulf %17, %21 : vector<8x128xf32>
    %c0_9 = arith.constant 0 : index
    %c0_10 = arith.constant 0 : index
    %23 = vector.load %arg4[%c0_9, %c0_10] : memref<8x128xf32, #tpu.memory_space<vmem>>, vector<8x128xf32>
    tpu.vector_store %arg4[%c0_9, %c0_10], %22 {strides = array<i32>} : memref<8x128xf32, #tpu.memory_space<vmem>>, vector<8x128xf32>,
    return
  }
  func.func @transform_0(%arg0: i32) -> (i32, i32) {
    %c0_i32 = arith.constant 0 : i32
    %c0_i32_0 = arith.constant 0 : i32
    return %arg0, %c0_i32 : i32, i32
  }
  func.func @transform_1(%arg0: i32) -> (i32, i32) {
    %c0_i32 = arith.constant 0 : i32
    %c0_i32_0 = arith.constant 0 : i32
    %c0_i32_1 = arith.constant 0 : i32
    return %c0_i32, %c0_i32_0 : i32, i32
  }
  func.func @transform_2(%arg0: i32) -> (i32, i32) {
    %c0_i32 = arith.constant 0 : i32
    %c0_i32_0 = arith.constant 0 : i32
    %c0_i32_1 = arith.constant 0 : i32
    return %c0_i32, %c0_i32_0 : i32, i32
  }
  func.func @transform_3(%arg0: i32) -> (i32, i32) {
    %c0_i32 = arith.constant 0 : i32
    %c0_i32_0 = arith.constant 0 : i32
    return %arg0, %c0_i32 : i32, i32
  }
}

</mosaic_0001>

<bundles_post_ra>
// kernel: iris_forward.1
= control target key start
LH: loop header
LB: loop body
LE: loop exit
PB: predicated region body
PF: predicated region fallthrough
CT: control target
= control target key end

     0   :  { %vm27_vm0 = vcmask 1043456   ;;  %vm23_vm1 = vcmask 31744   ;;  %v136_v0 = vmov 0.0   ;;  %vm137_vm2 = vmmov 0   ;;  %s170_s1 = inlined_call_operand.vmem [shape: f32[4,128], index: 1, kind: input, shape index: {}]   ;;  %s171_s0 = inlined_call_operand.vmem [shape: f32[8,4], index: 0, kind: input, shape index: {}]   ;;  %s172_s2 = inlined_call_operand.vmem [shape: f32[1,128], index: 2, kind: input, shape index: {}]   ;;  %s173_s3 = inlined_call_operand.vmem [shape: f32[8,128], index: 3, kind: output, shape index: {}]  }
   0x1   :  { %125 = vmatprep.subr.mxu0 %v136_v0  ;;  %v15_v1 = vld [vmem:[%s170_s1] sm:$0xf]  ;;  %127 = vmatprep.mubr.msk.f32.mxu0 %vm137_vm2, %v136_v0  ;;  %v102_v11 = vlaneseq }
   0x2   :  { %v14_v2 = vld [vmem:[%s171_s0] sm:$0xff]  ;;  %126 = vmatpush3.msk.msra.mxu0 %vm27_vm0, %v15_v1 }
   0x3   :  { %128 = vmatmul.mubr.msk.f32.vlgmr.msra.gmra.mrb[0].mxu0 %vm23_vm1, %v14_v2  ;;  %v120_v3 = vld [vmem:[%s172_s2] ss:$0 sm:$0xff]  ;;  %v103_v12 = vand.u32 127, %v102_v11 }
   0x5   :  { %vm104_vm3 = vcmp.lt.s32.totalorder %v103_v12, 3 }
  0xd6   :  { %v97_v4 = vpop.f32.mrb[0].mxu0 }
  0xd7   :  { %v98_v5 = vadd.f32 %v120_v3, %v97_v4  ;;  %v129_v6 = vpop.f32.mrb[1].mxu0 }
  0xd9   :  { %v101_v7 = vmax.f32 %v98_v5, 0.0 }
  0xdb   :  { %105 = vmax.xlane.f32.xlu0 %v101_v7 }
 0x168   :  { %v106_v8 = vpop.xlane.xlu0 %105 }
 0x169   :  { %v107_v9 = vsub.f32 %v101_v7, %v106_v8 }
 0x16b   :  { %v108_v10 = vmul.f32 1.442695, %v107_v9 }
 0x16d   :  { %132 = vpow2.f32 %v108_v10 }
 0x177   :  { %v133_v13 = vpop.eup %132 }
 0x178   :  { %v110_v14 = vsel %vm104_vm3, %v133_v13, 0.0 }
 0x179   :  { %111 = vadd.xlane.f32.xlu0 %v110_v14 }
 0x206   :  { %v112_v15 = vpop.xlane.xlu0 %111 }
 0x207   :  { %134 = vrcp.f32 %v112_v15 }
 0x211   :  { %v135_v16 = vpop.eup %134 }
 0x212   :  { %v114_v17 = vmul.f32 %v135_v16, %v110_v14 }
 0x214   :  { %115 = vst [vmem:[%s173_s3] sm:$0xff] %v114_v17 }

</bundles_post_ra>
